<compile_context>
chip_gen: v7x
topology: tpu7x:2x2x1
jax: 0.10.0
libtpu: 0.0.40
codegen_flags: <defaults>
</compile_context>

<pallas_src>
import functools

import jax
import jax.numpy as jnp
from jax.experimental import pallas as pl
from jax.experimental.pallas import tpu as pltpu


NPAD = 128   # padded fc_q output lanes per path (real outputs = 3)
N_OUT = 3


def numq_kernel(x_ref, w1_ref, b1_ref, w2_ref, b2_ref, w3_ref, b3_ref,
                wq_ref, bq_ref, out_ref):
    x = x_ref[...]                                           # (Bt, 200)

    # fc1 + relu   (bf16 MXU operands, f32 accumulation)
    h1 = jnp.dot(x.astype(jnp.bfloat16), w1_ref[...],
                 preferred_element_type=jnp.float32) + b1_ref[...]
    h1 = jnp.maximum(h1, 0.0)

    # fc2 + relu
    h2 = jnp.dot(h1.astype(jnp.bfloat16), w2_ref[...],
                 preferred_element_type=jnp.float32) + b2_ref[...]
    h2 = jnp.maximum(h2, 0.0)

    # fc3 (no activation)
    h3 = jnp.dot(h2.astype(jnp.bfloat16), w3_ref[...],
                 preferred_element_type=jnp.float32) + b3_ref[...]

    # Fused fc_q along lanes: [relu(h3) | sigmoid(h3)] (Bt, 100) through one
    # block-diagonal (100, 256) weight. Left 128 lanes = q path (real lanes
    # 0..2, zero-padded), right 128 lanes = softmax path (real lanes 3..5,
    # -1e30 bias on all other lanes).
    a = jnp.concatenate([jnp.maximum(h3, 0.0), jax.nn.sigmoid(h3)], axis=-1)
    qs = jnp.dot(a.astype(jnp.bfloat16), wq_ref[...],
                 preferred_element_type=jnp.float32) + bq_ref[...]   # (Bt, 256)

    q = qs[:, :NPAD]          # lanes 0..2 real, lanes 3..127 exactly 0
    s = qs[:, NPAD:]          # lanes 3..5 real, others -1e30 (masked)

    # Exact softmax (rows must sum to 1); masked lanes: exp underflows to 0.
    m = jnp.max(s, axis=-1, keepdims=True)
    e = jnp.exp(s - m)
    r = e / jnp.sum(e, axis=-1, keepdims=True)                # zeros on masked lanes

    # Pack q (lanes 0..2) and r (lanes 3..5) into one lane-dense 128-wide store.
    out_ref[...] = (q + r).astype(out_ref.dtype)


def _round_up(v, m):
    return (v + m - 1) // m * m


@functools.partial(jax.jit, static_argnames=("block_b",))
def numq_forward(x, params, block_b=1024):
    w1, b1, w2, b2, w3, b3, wq, bq = params
    B, F = x.shape

    # ---- batch tiling ------------------------------------------------------
    bb = min(block_b, _round_up(B, 8))
    # v7x has 2 TensorCores: at moderate/large batch keep >= 2 grid steps so the
    # "parallel" axis can be sharded across both cores.
    if B >= 512 and pl.cdiv(B, bb) < 2:
        bb = _round_up(pl.cdiv(B, 2), 8)
    Bp = _round_up(B, bb)
    if Bp != B:
        x = jnp.pad(x, ((0, Bp - B), (0, 0)))
    grid = (Bp // bb,)

    # ---- fc_q: block-diagonal lane-fused weight + bias ---------------------
    # q-path columns at lanes 0..2 (zero pad), r-path columns at lanes 3..5.
    wq_q = jnp.pad(wq, ((0, 0), (0, NPAD - N_OUT)))
    wq_r = jnp.pad(wq, ((0, 0), (N_OUT, NPAD - 2 * N_OUT)))
    wq_big = jnp.concatenate(
        [jnp.concatenate([wq_q, jnp.zeros_like(wq_q)], axis=1),
         jnp.concatenate([jnp.zeros_like(wq_r), wq_r], axis=1)],
        axis=0)                                                # (100, 256)
    bq_q = jnp.pad(bq, ((0, 0), (0, NPAD - N_OUT)))                              # zeros
    bq_r = jnp.pad(bq, ((0, 0), (N_OUT, NPAD - 2 * N_OUT)), constant_values=-1e30)
    bq_big = jnp.concatenate([bq_q, bq_r], axis=1)             # (1, 256) f32

    # bf16 weights (MXU-native), f32 biases.
    w1b = w1.astype(jnp.bfloat16)
    w2b = w2.astype(jnp.bfloat16)
    w3b = w3.astype(jnp.bfloat16)
    wqb = wq_big.astype(jnp.bfloat16)

    def resident(shape):
        # Constant block index -> DMA'd once, VMEM-resident across grid steps.
        return pl.BlockSpec(shape, lambda i: (0, 0))

    out = pl.pallas_call(
        numq_kernel,
        out_shape=jax.ShapeDtypeStruct((Bp, NPAD), jnp.float32),
        grid=grid,
        in_specs=[
            pl.BlockSpec((bb, F), lambda i: (i, 0)),
            resident(w1b.shape), resident(b1.shape),
            resident(w2b.shape), resident(b2.shape),
            resident(w3b.shape), resident(b3.shape),
            resident(wqb.shape), resident(bq_big.shape),
        ],
        out_specs=pl.BlockSpec((bb, NPAD), lambda i: (i, 0)),
        compiler_params=pltpu.CompilerParams(
            dimension_semantics=("parallel",)),
    )(x, w1b, b1, w2b, b2, w3b, b3, wqb, bq_big)

    return out[:B, :N_OUT], out[:B, N_OUT:2 * N_OUT]


def init_params(key):
    """Deterministic synthetic params. Weights stored as (in, out) = PyTorch W.T."""
    ks = jax.random.split(key, 8)

    def linear(kw, kb, fan_in, fan_out):
        bound = 1.0 / jnp.sqrt(fan_in)
        w = jax.random.uniform(kw, (fan_in, fan_out), jnp.float32, -bound, bound)
        b = jax.random.uniform(kb, (1, fan_out), jnp.float32, -bound, bound)
        return w, b

    w1, b1 = linear(ks[0], ks[1], 200, 200)
    w2, b2 = linear(ks[2], ks[3], 200, 100)
    w3, b3 = linear(ks[4], ks[5], 100, 50)
    wq, bq = linear(ks[6], ks[7], 50, 3)
    return (w1, b1, w2, b2, w3, b3, wq, bq)


def numq_reference(x, params):
    w1, b1, w2, b2, w3, b3, wq, bq = params
    h = jax.nn.relu(x @ w1 + b1)
    h = jax.nn.relu(h @ w2 + b2)
    h = h @ w3 + b3
    q = jax.nn.relu(h) @ wq + bq
    r = jax.nn.softmax(jax.nn.sigmoid(h) @ wq + bq, axis=-1)
    return q, r


if __name__ == "__main__":
    key = jax.random.PRNGKey(0)
    k_params, k_x = jax.random.split(key)

    params = init_params(k_params)
    B = 8
    x = jax.random.normal(k_x, (B, 200), jnp.float32)

    q, r = numq_forward(x, params)
    q, r = jax.block_until_ready((q, r))

    q_ref, r_ref = numq_reference(x, params)
    assert q.shape == (B, 3) and r.shape == (B, 3)
    # bf16 weight quantization -> relaxed tolerance vs. f32 reference.
    assert jnp.allclose(q, q_ref, atol=2e-2, rtol=2e-2)
    assert jnp.allclose(r, r_ref, atol=2e-2, rtol=2e-2)
    # Exact softmax divide: rows sum to 1 to f32 roundoff.
    assert jnp.allclose(jnp.sum(r, axis=-1), 1.0, atol=1e-5)

    print("KERNEL_OK")
</pallas_src>

<mosaic_0001>
module attributes {stable_mosaic.version = 11 : i64} {
  func.func @numq_kernel(%arg0: i32, %arg1: memref<8x200xf32, #tpu.memory_space<vmem>>, %arg2: memref<200x200xbf16, #tpu.memory_space<vmem>>, %arg3: memref<1x200xf32, #tpu.memory_space<vmem>>, %arg4: memref<200x100xbf16, #tpu.memory_space<vmem>>, %arg5: memref<1x100xf32, #tpu.memory_space<vmem>>, %arg6: memref<100x50xbf16, #tpu.memory_space<vmem>>, %arg7: memref<1x50xf32, #tpu.memory_space<vmem>>, %arg8: memref<100x256xbf16, #tpu.memory_space<vmem>>, %arg9: memref<1x256xf32, #tpu.memory_space<vmem>>, %arg10: memref<8x128xf32, #tpu.memory_space<vmem>>) attributes {dimension_semantics = [#tpu.dimension_semantics<parallel>], iteration_bounds = array<i64: 1>, scalar_prefetch = 0 : i64, scratch_operands = 0 : i64, tpu.core_type = #tpu.core_type<tc>, window_params = [{transform_indices = @transform_0, window_bounds = array<i64: 8, 200>}, {pipeline_mode = #tpu.pipeline_mode<synchronous>, transform_indices = @transform_1, window_bounds = array<i64: 200, 200>}, {pipeline_mode = #tpu.pipeline_mode<synchronous>, transform_indices = @transform_2, window_bounds = array<i64: 1, 200>}, {pipeline_mode = #tpu.pipeline_mode<synchronous>, transform_indices = @transform_3, window_bounds = array<i64: 200, 100>}, {pipeline_mode = #tpu.pipeline_mode<synchronous>, transform_indices = @transform_4, window_bounds = array<i64: 1, 100>}, {pipeline_mode = #tpu.pipeline_mode<synchronous>, transform_indices = @transform_5, window_bounds = array<i64: 100, 50>}, {pipeline_mode = #tpu.pipeline_mode<synchronous>, transform_indices = @transform_6, window_bounds = array<i64: 1, 50>}, {pipeline_mode = #tpu.pipeline_mode<synchronous>, transform_indices = @transform_7, window_bounds = array<i64: 100, 256>}, {pipeline_mode = #tpu.pipeline_mode<synchronous>, transform_indices = @transform_8, window_bounds = array<i64: 1, 256>}, {transform_indices = @transform_9, window_bounds = array<i64: 8, 128>}]} {
    %c0 = arith.constant 0 : index
    %c0_0 = arith.constant 0 : index
    %0 = vector.load %arg1[%c0, %c0_0] : memref<8x200xf32, #tpu.memory_space<vmem>>, vector<8x200xf32>
    %1 = arith.truncf %0 : vector<8x200xf32> to vector<8x200xbf16>
    %c0_1 = arith.constant 0 : index
    %c0_2 = arith.constant 0 : index
    %2 = vector.load %arg2[%c0_1, %c0_2] : memref<200x200xbf16, #tpu.memory_space<vmem>>, vector<200x200xbf16>
    %cst = arith.constant dense<0.000000e+00> : vector<8x200xf32>
    %3 = tpu.matmul %1, %2, %cst {dimension_numbers = #tpu.dot_dimension_numbers<[1], [0], [0], [1], [0, 0, 1, 1], [], []>} : vector<8x200xbf16>, vector<200x200xbf16>, vector<8x200xf32> -> vector<8x200xf32>
    %c0_3 = arith.constant 0 : index
    %c0_4 = arith.constant 0 : index
    %4 = vector.load %arg3[%c0_3, %c0_4] : memref<1x200xf32, #tpu.memory_space<vmem>>, vector<1x200xf32>
    %5 = vector.broadcast %4 : vector<1x200xf32> to vector<8x200xf32>
    %6 = arith.addf %3, %5 : vector<8x200xf32>
    %cst_5 = arith.constant 0.000000e+00 : f32
    %7 = vector.broadcast %cst_5 : f32 to vector<8x200xf32>
    %8 = arith.maximumf %6, %7 : vector<8x200xf32>
    %9 = arith.truncf %8 : vector<8x200xf32> to vector<8x200xbf16>
    %c0_6 = arith.constant 0 : index
    %c0_7 = arith.constant 0 : index
    %10 = vector.load %arg4[%c0_6, %c0_7] : memref<200x100xbf16, #tpu.memory_space<vmem>>, vector<200x100xbf16>
    %cst_8 = arith.constant dense<0.000000e+00> : vector<8x100xf32>
    %11 = tpu.matmul %9, %10, %cst_8 {dimension_numbers = #tpu.dot_dimension_numbers<[1], [0], [0], [1], [0, 0, 1, 1], [], []>} : vector<8x200xbf16>, vector<200x100xbf16>, vector<8x100xf32> -> vector<8x100xf32>
    %c0_9 = arith.constant 0 : index
    %c0_10 = arith.constant 0 : index
    %12 = vector.load %arg5[%c0_9, %c0_10] : memref<1x100xf32, #tpu.memory_space<vmem>>, vector<1x100xf32>
    %13 = vector.broadcast %12 : vector<1x100xf32> to vector<8x100xf32>
    %14 = arith.addf %11, %13 : vector<8x100xf32>
    %cst_11 = arith.constant 0.000000e+00 : f32
    %15 = vector.broadcast %cst_11 : f32 to vector<8x100xf32>
    %16 = arith.maximumf %14, %15 : vector<8x100xf32>
    %17 = arith.truncf %16 : vector<8x100xf32> to vector<8x100xbf16>
    %c0_12 = arith.constant 0 : index
    %c0_13 = arith.constant 0 : index
    %18 = vector.load %arg6[%c0_12, %c0_13] : memref<100x50xbf16, #tpu.memory_space<vmem>>, vector<100x50xbf16>
    %cst_14 = arith.constant dense<0.000000e+00> : vector<8x50xf32>
    %19 = tpu.matmul %17, %18, %cst_14 {dimension_numbers = #tpu.dot_dimension_numbers<[1], [0], [0], [1], [0, 0, 1, 1], [], []>} : vector<8x100xbf16>, vector<100x50xbf16>, vector<8x50xf32> -> vector<8x50xf32>
    %c0_15 = arith.constant 0 : index
    %c0_16 = arith.constant 0 : index
    %20 = vector.load %arg7[%c0_15, %c0_16] : memref<1x50xf32, #tpu.memory_space<vmem>>, vector<1x50xf32>
    %21 = vector.broadcast %20 : vector<1x50xf32> to vector<8x50xf32>
    %22 = arith.addf %19, %21 : vector<8x50xf32>
    %cst_17 = arith.constant 0.000000e+00 : f32
    %23 = vector.broadcast %cst_17 : f32 to vector<8x50xf32>
    %24 = arith.maximumf %22, %23 : vector<8x50xf32>
    %25 = arith.negf %22 : vector<8x50xf32>
    %26 = math.exp %25 : vector<8x50xf32>
    %cst_18 = arith.constant 1.000000e+00 : f32
    %27 = vector.broadcast %cst_18 : f32 to vector<8x50xf32>
    %28 = arith.addf %27, %26 : vector<8x50xf32>
    %29 = arith.divf %27, %28 : vector<8x50xf32>
    %30 = tpu.concatenate %24, %29 in 1 : vector<8x50xf32>, vector<8x50xf32> -> vector<8x100xf32>
    %31 = arith.truncf %30 : vector<8x100xf32> to vector<8x100xbf16>
    %c0_19 = arith.constant 0 : index
    %c0_20 = arith.constant 0 : index
    %32 = vector.load %arg8[%c0_19, %c0_20] : memref<100x256xbf16, #tpu.memory_space<vmem>>, vector<100x256xbf16>
    %cst_21 = arith.constant dense<0.000000e+00> : vector<8x256xf32>
    %33 = tpu.matmul %31, %32, %cst_21 {dimension_numbers = #tpu.dot_dimension_numbers<[1], [0], [0], [1], [0, 0, 1, 1], [], []>} : vector<8x100xbf16>, vector<100x256xbf16>, vector<8x256xf32> -> vector<8x256xf32>
    %c0_22 = arith.constant 0 : index
    %c0_23 = arith.constant 0 : index
    %34 = vector.load %arg9[%c0_22, %c0_23] : memref<1x256xf32, #tpu.memory_space<vmem>>, vector<1x256xf32>
    %35 = vector.broadcast %34 : vector<1x256xf32> to vector<8x256xf32>
    %36 = arith.addf %33, %35 : vector<8x256xf32>
    %37 = vector.extract_strided_slice %36 {offsets = [0, 0], sizes = [8, 128], strides = [1, 1]} : vector<8x256xf32> to vector<8x128xf32>
    %38 = vector.extract_strided_slice %36 {offsets = [0, 128], sizes = [8, 128], strides = [1, 1]} : vector<8x256xf32> to vector<8x128xf32>
    %cst_24 = arith.constant dense<0xFF800000> : vector<8xf32>
    %39 = vector.multi_reduction <maximumf>, %38, %cst_24 [1] : vector<8x128xf32> to vector<8xf32>
    %40 = vector.shape_cast %39 : vector<8xf32> to vector<8x1xf32>
    %41 = vector.broadcast %40 : vector<8x1xf32> to vector<8x128xf32>
    %42 = arith.subf %38, %41 : vector<8x128xf32>
    %43 = math.exp %42 : vector<8x128xf32>
    %cst_25 = arith.constant dense<0.000000e+00> : vector<8xf32>
    %44 = vector.multi_reduction <add>, %43, %cst_25 [1] : vector<8x128xf32> to vector<8xf32>
    %45 = vector.shape_cast %44 : vector<8xf32> to vector<8x1xf32>
    %46 = vector.broadcast %45 : vector<8x1xf32> to vector<8x128xf32>
    %47 = arith.divf %43, %46 : vector<8x128xf32>
    %48 = arith.addf %37, %47 : vector<8x128xf32>
    %c0_26 = arith.constant 0 : index
    %c0_27 = arith.constant 0 : index
    %49 = vector.load %arg10[%c0_26, %c0_27] : memref<8x128xf32, #tpu.memory_space<vmem>>, vector<8x128xf32>
    tpu.vector_store %arg10[%c0_26, %c0_27], %48 {strides = array<i32>} : memref<8x128xf32, #tpu.memory_space<vmem>>, vector<8x128xf32>,
    return
  }
  func.func @transform_0(%arg0: i32) -> (i32, i32) {
    %c0_i32 = arith.constant 0 : i32
    %c0_i32_0 = arith.constant 0 : i32
    return %arg0, %c0_i32 : i32, i32
  }
  func.func @transform_1(%arg0: i32) -> (i32, i32) {
    %c0_i32 = arith.constant 0 : i32
    %c0_i32_0 = arith.constant 0 : i32
    %c0_i32_1 = arith.constant 0 : i32
    return %c0_i32, %c0_i32_0 : i32, i32
  }
  func.func @transform_2(%arg0: i32) -> (i32, i32) {
    %c0_i32 = arith.constant 0 : i32
    %c0_i32_0 = arith.constant 0 : i32
    %c0_i32_1 = arith.constant 0 : i32
    return %c0_i32, %c0_i32_0 : i32, i32
  }
  func.func @transform_3(%arg0: i32) -> (i32, i32) {
    %c0_i32 = arith.constant 0 : i32
    %c0_i32_0 = arith.constant 0 : i32
    %c0_i32_1 = arith.constant 0 : i32
    return %c0_i32, %c0_i32_0 : i32, i32
  }
  func.func @transform_4(%arg0: i32) -> (i32, i32) {
    %c0_i32 = arith.constant 0 : i32
    %c0_i32_0 = arith.constant 0 : i32
    %c0_i32_1 = arith.constant 0 : i32
    return %c0_i32, %c0_i32_0 : i32, i32
  }
  func.func @transform_5(%arg0: i32) -> (i32, i32) {
    %c0_i32 = arith.constant 0 : i32
    %c0_i32_0 = arith.constant 0 : i32
    %c0_i32_1 = arith.constant 0 : i32
    return %c0_i32, %c0_i32_0 : i32, i32
  }
  func.func @transform_6(%arg0: i32) -> (i32, i32) {
    %c0_i32 = arith.constant 0 : i32
    %c0_i32_0 = arith.constant 0 : i32
    %c0_i32_1 = arith.constant 0 : i32
    return %c0_i32, %c0_i32_0 : i32, i32
  }
  func.func @transform_7(%arg0: i32) -> (i32, i32) {
    %c0_i32 = arith.constant 0 : i32
    %c0_i32_0 = arith.constant 0 : i32
    %c0_i32_1 = arith.constant 0 : i32
    return %c0_i32, %c0_i32_0 : i32, i32
  }
  func.func @transform_8(%arg0: i32) -> (i32, i32) {
    %c0_i32 = arith.constant 0 : i32
    %c0_i32_0 = arith.constant 0 : i32
    %c0_i32_1 = arith.constant 0 : i32
    return %c0_i32, %c0_i32_0 : i32, i32
  }
  func.func @transform_9(%arg0: i32) -> (i32, i32) {
    %c0_i32 = arith.constant 0 : i32
    %c0_i32_0 = arith.constant 0 : i32
    return %arg0, %c0_i32 : i32, i32
  }
}

</mosaic_0001>

<bundles_post_ra>
// kernel: numq_forward.1
= control target key start
LH: loop header
LB: loop body
LE: loop exit
PB: predicated region body
PF: predicated region fallthrough
CT: control target
= control target key end

     0   :  { %v871_v1 = vmov 0   ;;  %vm199_vm0 = vcmask 588800   ;;  %vm203_vm1 = vcmask 1043456   ;;  %v872_v47 = vmov 0.0   ;;  %s1156_s1 = inlined_call_operand.vmem [shape: bf16[200,200], index: 1, kind: input, shape index: {}]   ;;  %s1157_s0 = inlined_call_operand.vmem [shape: f32[8,200], index: 0, kind: input, shape index: {}]   ;;  %s1158_s3 = inlined_call_operand.vmem [shape: bf16[200,100], index: 3, kind: input, shape index: {}]   ;;  %s1159_s5 = inlined_call_operand.vmem [shape: bf16[100,50], index: 5, kind: input, shape index: {}]   ;;  %s1160_s2 = inlined_call_operand.vmem [shape: f32[1,200], index: 2, kind: input, shape index: {}]   ;;  %s1161_s4 = inlined_call_operand.vmem [shape: f32[1,100], index: 4, kind: input, shape index: {}]   ;;  %s1162_s7 = inlined_call_operand.vmem [shape: bf16[100,256], index: 7, kind: input, shape index: {}]   ;;  %s1163_s6 = inlined_call_operand.vmem [shape: f32[1,50], index: 6, kind: input, shape index: {}]   ;;  %s1164_s8 = inlined_call_operand.vmem [shape: f32[1,256], index: 8, kind: input, shape index: {}]   ;;  %s1165_s9 = inlined_call_operand.vmem [shape: f32[8,128], index: 9, kind: output, shape index: {}]  }
   0x1   :  { %v785_v0 = vld [vmem:[%s1156_s1 + $0x4] ss:$8 sps:$4 sm:$0xff]   ;;  %368 = vmatprep.subr.bf16.mxu1 %v871_v1  ;;  %v787_v2 = vld [vmem:[%s1156_s1] ss:$8 sps:$4 sm:$0xff]   ;;  %v788_v3 = vld [vmem:[%s1156_s1 + $0x14] ss:$8 sps:$4 sm:$0xff]   ;;  %v64_v53 = vlaneseq }
   0x2   :  { %210 = vmatprep.subr.bf16.mxu0 %v785_v0  ;;  %v790_v4 = vld [vmem:[%s1156_s1 + $0x10] ss:$8 sps:$4 sm:$0xff]   ;;  %v791_v5 = vld [vmem:[%s1156_s1 + $0x24] ss:$8 sps:$4 sm:$0xff]   ;;  %v793_v6 = vld [vmem:[%s1156_s1 + $0x20] ss:$8 sps:$4 sm:$0xff]  }
   0x3   :  { %211 = vmatpush1.bf16.msra.mxu0 %v787_v2  ;;  %v794_v7 = vld [vmem:[%s1156_s1 + $0x34] ss:$8 sps:$4 sm:$0xff]   ;;  %v796_v8 = vld [vmem:[%s1156_s1 + $0x30] ss:$8 sps:$4 sm:$0xff]   ;;  %v797_v9 = vld [vmem:[%s1156_s1 + $0x44] ss:$8 sps:$4 sm:$0xff]  }
   0x4   :  { %212 = vmatprep.subr.bf16.mxu0 %v788_v3  ;;  %v799_v10 = vld [vmem:[%s1156_s1 + $0x40] ss:$8 sps:$4 sm:$0xff]   ;;  %v800_v11 = vld [vmem:[%s1156_s1 + $0x54] ss:$8 sps:$4 sm:$0xff]   ;;  %v802_v15 = vld [vmem:[%s1156_s1 + $0x50] ss:$8 sps:$4 sm:$0xff]  }
   0x5   :  { %v34_v12 = vld [vmem:[%s1157_s0 + $0x8] sm:$0xff]  ;;  %v823_v14 = vld [vmem:[%s1158_s3] sm:$0xff]   ;;  %v806_v19 = vld [vmem:[%s1156_s1 + $0x74] ss:$8 sps:$4 sm:$0xff]   ;;  %v1077_v54 = vshrl.u32 %v64_v53, 7  ;;  %vm473_vm2 = vcmask 1041408  }
   0x6   :  { %v36_v13 = vpack.c.bf16 %v34_v12, %v34_v12  ;;  %v803_v16 = vld [vmem:[%s1156_s1 + $0x64] ss:$8 sps:$4 sm:$0xff]   ;;  %369 = vmatpush1.bf16.msra.mxu1 %v823_v14  ;;  %v805_v18 = vld [vmem:[%s1156_s1 + $0x60] ss:$8 sps:$4 sm:$0xff]   ;;  %v825_v20 = vld [vmem:[%s1158_s3 + $0x10] sm:$0xff]   ;;  %vm873_vm3 = vmmov 0  }
   0x7   :  { %213 = vmatpush1.bf16.msra.mxu0 %v790_v4  ;;  %v824_v17 = vld [vmem:[%s1158_s3 + $0x8] sm:$0xff]   ;;  %370 = vmatprep.subr.bf16.mxu1 %v871_v1  ;;  %v808_v21 = vld [vmem:[%s1156_s1 + $0x70] ss:$8 sps:$4 sm:$0xff]   ;;  %v812_v25 = vld [vmem:[%s1156_s1 + $0x94] ss:$8 sps:$4 sm:$0xff]   ;;  %v66_v55 = vsub.s32 0, %v1077_v54 }
   0x8   :  { %214 = vmatprep.subr.bf16.mxu0 %v791_v5  ;;  %713 = vmatprep.mubr.msk.bf16.mxu0 %vm199_vm0, %v36_v13  ;;  %v809_v22 = vld [vmem:[%s1156_s1 + $0x84] ss:$8 sps:$4 sm:$0xff]   ;;  %v826_v23 = vld [vmem:[%s1158_s3 + $0x18] sm:$0xff]   ;;  %v811_v24 = vld [vmem:[%s1156_s1 + $0x80] ss:$8 sps:$4 sm:$0xff]   ;;  %v70_v57 = vsub.s32 1, %v1077_v54 }
   0x9   :  { %v827_v26 = vld [vmem:[%s1158_s3 + $0x20] sm:$0xff]   ;;  %v814_v27 = vld [vmem:[%s1156_s1 + $0x90] ss:$8 sps:$4 sm:$0xff]   ;;  %v828_v29 = vld [vmem:[%s1158_s3 + $0x28] sm:$0xff]   ;;  %vm469_vm4 = vcmask 818176   ;;  %vm528_vm5 = vcmask 408576  }
   0xa   :  { %371 = vmatpush1.bf16.msra.mxu1 %v824_v17  ;;  %v815_v28 = vld [vmem:[%s1156_s1 + $0xa4] ss:$8 sps:$4 sm:$0xff]   ;;  %v817_v30 = vld [vmem:[%s1156_s1 + $0xa0] ss:$8 sps:$4 sm:$0xff]   ;;  %v818_v31 = vld [vmem:[%s1156_s1 + $0xb4] ss:$8 sps:$4 sm:$0xff]  }
   0xb   :  { %215 = vmatpush1.bf16.msra.mxu0 %v793_v6  ;;  %372 = vmatprep.subr.bf16.mxu1 %v871_v1  ;;  %v829_v32 = vld [vmem:[%s1158_s3 + $0x30] sm:$0xff]   ;;  %v61_v33 = vld [vmem:[%s1156_s1 + $0xc0] sm:$0xff]  ;;  %v830_v37 = vld [vmem:[%s1158_s3 + $0x38] sm:$0xff]  }
   0xc   :  { %216 = vmatprep.subr.bf16.mxu0 %v794_v7  ;;  %v820_v34 = vld [vmem:[%s1156_s1 + $0xb0] ss:$8 sps:$4 sm:$0xff]   ;;  %v711_v35 = vcombine.high %v61_v33, %v61_v33  ;;  %v710_v36 = vcombine.low %v61_v33, %v61_v33  ;;  %v33_v38 = vld [vmem:[%s1157_s0] sm:$0xff]  ;;  %v832_v42 = vld [vmem:[%s1158_s3 + $0x48] sm:$0xff]  }
   0xd   :  { %v831_v40 = vld [vmem:[%s1158_s3 + $0x40] sm:$0xff]   ;;  %v35_v41 = vpack.c.bf16 %v33_v38, %v33_v38  ;;  %v833_v43 = vld [vmem:[%s1158_s3 + $0x50] sm:$0xff]   ;;  %v834_v44 = vld [vmem:[%s1158_s3 + $0x58] sm:$0xff]  }
   0xe   :  { %373 = vmatpush1.bf16.msra.mxu1 %v825_v20  ;;  %v205_v39 = vsel %vm203_vm1, %v710_v36, 0  ;;  %v835_v45 = vld [vmem:[%s1158_s3 + $0x60] ss:$0 sps:$4 sm:$0xff]   ;;  %v837_v49 = vld [vmem:[%s1159_s5 + $0x8] sm:$0xff]   ;;  %v838_v50 = vld [vmem:[%s1159_s5 + $0x10] sm:$0xff]  }
   0xf   :  { %217 = vmatpush1.bf16.msra.mxu0 %v796_v8  ;;  %374 = vmatprep.subr.bf16.mxu1 %v871_v1  ;;  %v366_v46 = vsel %vm203_vm1, %v835_v45, 0  ;;  %v836_v48 = vld [vmem:[%s1159_s5] sm:$0xff]   ;;  %v839_v51 = vld [vmem:[%s1159_s5 + $0x18] sm:$0xff]   ;;  %v841_v7 = vld [vmem:[%s1159_s5 + $0x28] sm:$0xff]  }
  0x10   :  { %218 = vmatprep.subr.bf16.mxu0 %v797_v9  ;;  %v840_v52 = vld [vmem:[%s1159_s5 + $0x20] sm:$0xff]   ;;  %v842_v8 = vld [vmem:[%s1159_s5 + $0x30] ss:$0 sps:$4 sm:$0x33]  }
  0x11   :  { %v62_v56 = vld [vmem:[%s1160_s2] sm:$0x3]  ;;  %v475_v9 = vsel %vm473_vm2, %v842_v8, 0  ;;  %v846_v20 = vld [vmem:[%s1162_s7 + $0x10] ss:$8 sps:$4 sm:$0xff]  }
  0x12   :  { %375 = vmatpush1.bf16.msra.mxu1 %v826_v23  ;;  %v67_v58 = vrot.slane %v62_v56, %v66_v55  ;;  %v71_v59 = vrot.slane %v62_v56, %v70_v57  ;;  %v843_v17 = vld [vmem:[%s1162_s7] ss:$8 sps:$4 sm:$0xff]   ;;  %v854_v23 = vld [vmem:[%s1162_s7 + $0x34] ss:$8 sps:$4 sm:$0xff]  }
  0x13   :  { %219 = vmatpush1.bf16.msra.mxu0 %v799_v10  ;;  %376 = vmatprep.subr.bf16.mxu1 %v871_v1 }
  0x14   :  { %220 = vmatprep.subr.bf16.mxu0 %v800_v11 }
  0x16   :  { %377 = vmatpush1.bf16.msra.mxu1 %v827_v26  ;;  %v855_v26 = vld [vmem:[%s1162_s7 + $0x40] ss:$8 sps:$4 sm:$0xff]  }
  0x17   :  { %221 = vmatpush1.bf16.msra.mxu0 %v802_v15  ;;  %378 = vmatprep.subr.bf16.mxu1 %v871_v1 }
  0x18   :  { %222 = vmatprep.subr.bf16.mxu0 %v803_v16 }
  0x1a   :  { %379 = vmatpush1.bf16.msra.mxu1 %v828_v29  ;;  %v858_v29 = vld [vmem:[%s1162_s7 + $0x50] ss:$8 sps:$4 sm:$0xff]  }
  0x1b   :  { %223 = vmatpush1.bf16.msra.mxu0 %v805_v18  ;;  %380 = vmatprep.subr.bf16.mxu1 %v871_v1  ;;  %v845_v18 = vld [vmem:[%s1162_s7 + $0x4] ss:$8 sps:$4 sm:$0xff]  }
  0x1c   :  { %224 = vmatprep.subr.bf16.mxu0 %v806_v19  ;;  %v848_v19 = vld [vmem:[%s1162_s7 + $0x14] ss:$8 sps:$4 sm:$0xff]  }
  0x1e   :  { %381 = vmatpush1.bf16.msra.mxu1 %v829_v32 }
  0x1f   :  { %225 = vmatpush1.bf16.msra.mxu0 %v808_v21  ;;  %382 = vmatprep.subr.bf16.mxu1 %v871_v1  ;;  %v851_v21 = vld [vmem:[%s1162_s7 + $0x24] ss:$8 sps:$4 sm:$0xff]  }
  0x20   :  { %226 = vmatprep.subr.bf16.mxu0 %v809_v22  ;;  %v849_v22 = vld [vmem:[%s1162_s7 + $0x20] ss:$8 sps:$4 sm:$0xff]  }
  0x22   :  { %383 = vmatpush1.bf16.msra.mxu1 %v830_v37 }
  0x23   :  { %227 = vmatpush1.bf16.msra.mxu0 %v811_v24  ;;  %384 = vmatprep.subr.bf16.mxu1 %v871_v1  ;;  %v852_v24 = vld [vmem:[%s1162_s7 + $0x30] ss:$8 sps:$4 sm:$0xff]  }
  0x24   :  { %228 = vmatprep.subr.bf16.mxu0 %v812_v25  ;;  %v857_v25 = vld [vmem:[%s1162_s7 + $0x44] ss:$8 sps:$4 sm:$0xff]  }
  0x26   :  { %385 = vmatpush1.bf16.msra.mxu1 %v831_v40 }
  0x27   :  { %229 = vmatpush1.bf16.msra.mxu0 %v814_v27  ;;  %386 = vmatprep.subr.bf16.mxu1 %v871_v1  ;;  %v860_v27 = vld [vmem:[%s1162_s7 + $0x54] ss:$8 sps:$4 sm:$0xff]  }
  0x28   :  { %230 = vmatprep.subr.bf16.mxu0 %v815_v28  ;;  %v543_v28 = vld [vmem:[%s1162_s7 + $0x60] sm:$0x33]  ;;  %s874_s7 = smov 50  }
  0x29   :  { %v751_v38 = vcombine.low %v543_v28, %v543_v28 }
  0x2a   :  { %387 = vmatpush1.bf16.msra.mxu1 %v832_v42 }
  0x2b   :  { %231 = vmatpush1.bf16.msra.mxu0 %v817_v30  ;;  %388 = vmatprep.subr.bf16.mxu1 %v871_v1  ;;  %v752_v30 = vcombine.high %v543_v28, %v543_v28  ;;  %v625_v40 = vsel %vm473_vm2, %v751_v38, 0 }
  0x2c   :  { %232 = vmatprep.subr.bf16.mxu0 %v818_v31  ;;  %v729_v31 = vld [vmem:[%s1163_s6] ss:$0 sm:$0xff] }
  0x2e   :  { %389 = vmatpush1.bf16.msra.mxu1 %v833_v43 }
  0x2f   :  { %233 = vmatpush1.bf16.msra.mxu0 %v820_v34  ;;  %390 = vmatprep.subr.bf16.mxu1 %v871_v1 }
  0x30   :  { %712 = vmatprep.subr.msk.bf16.mxu0 %vm203_vm1, %v711_v35 }
  0x32   :  { %391 = vmatpush1.bf16.msra.mxu1 %v834_v44 }
  0x33   :  { %235 = vmatpush1.bf16.msra.mxu0 %v205_v39  ;;  %392 = vmatprep.subr.bf16.mxu1 %v871_v1 }
  0x34   :  { %763 = vmatprep.subr.bf16.mxu0 %v872_v47 }
  0x36   :  { %243 = vmatmul.mubr.bf16.vlgmr.msra.gmra.mrb[0].mxu0 %v35_v41  ;;  %393 = vmatpush1.bf16.msra.mxu1 %v366_v46 }
  0x37   :  { %764 = vmatpush3.bf16.msra.mxu0 %v836_v48  ;;  %777 = vmatprep.mubr.msk.bf16.mxu0 %vm873_vm3, %v872_v47 }
  0x38   :  { %765 = vmatprep.subr.bf16.mxu0 %v872_v47  ;;  %630 = vmatprep.subr.bf16.mxu1 %v845_v18 }
  0x3b   :  { %766 = vmatpush3.bf16.msra.mxu0 %v837_v49 }
  0x3c   :  { %767 = vmatprep.subr.bf16.mxu0 %v872_v47 }
  0x3f   :  { %768 = vmatpush3.bf16.msra.mxu0 %v838_v50 }
  0x40   :  { %769 = vmatprep.subr.bf16.mxu0 %v872_v47 }
  0x43   :  { %770 = vmatpush3.bf16.msra.mxu0 %v839_v51 }
  0x44   :  { %771 = vmatprep.subr.bf16.mxu0 %v872_v47 }
  0x47   :  { %772 = vmatpush3.bf16.msra.mxu0 %v840_v52 }
  0x48   :  { %773 = vmatprep.subr.bf16.mxu0 %v872_v47 }
  0x4b   :  { %774 = vmatpush3.bf16.msra.mxu0 %v841_v7 }
  0x4c   :  { %775 = vmatprep.subr.bf16.mxu0 %v872_v47  ;;  %v544_v47 = vld [vmem:[%s1164_s8] sm:$0x3] }
  0x4d   :  { %v553_v48 = vrot.slane %v544_v47, %v70_v57 }
  0x4f   :  { %776 = vmatpush3.bf16.msra.mxu0 %v475_v9 }
 0x109   :  { %v244_v60 = vpop.f32.mrb[0].mxu0 }
 0x10a   :  { %v245_v61 = vadd.f32 %v244_v60, %v67_v58  ;;  %v246_v62 = vpop.f32.mrb[1].mxu0 }
 0x10b   :  { %v247_v63 = vadd.f32 %v246_v62, %v71_v59  ;;  %v248_v0 = vpop.f32.mrb[2].mxu0  ;;  %v549_v62 = vrot.slane %v544_v47, %v66_v55 }
 0x10c   :  { %v251_v2 = vmax.f32 %v245_v61, 0.0  ;;  %v249_v3 = vpop.f32.mrb[3].mxu0 }
 0x10d   :  { %v252_v4 = vmax.f32 %v247_v63, 0.0 }
 0x10e   :  { %v253_v6 = vpack.c.bf16 %v251_v2, %v251_v2 }
 0x10f   :  { %v254_v5 = vpack.c.bf16 %v252_v4, %v252_v4 }
 0x111   :  { %728 = vmatprep.mubr.msk.bf16.mxu1 %vm199_vm0, %v254_v5 }
 0x112   :  { %401 = vmatmul.mubr.bf16.vlgmr.msra.gmra.mrb[0].mxu1 %v253_v6 }
 0x113   :  { %662 = vmatprep.mubr.bf16.mxu1 %v871_v1  ;;  %v714_v1 = vld [vmem:[%s1161_s4] ss:$0 sm:$0xff]  ;;  %631 = vmatpush1.bf16.msra.mxu1 %v843_v17 }
 0x114   :  { %632 = vmatprep.subr.bf16.mxu1 %v848_v19 }
 0x117   :  { %633 = vmatpush1.bf16.msra.mxu1 %v846_v20 }
 0x118   :  { %634 = vmatprep.subr.bf16.mxu1 %v851_v21 }
 0x11b   :  { %635 = vmatpush1.bf16.msra.mxu1 %v849_v22 }
 0x11c   :  { %636 = vmatprep.subr.bf16.mxu1 %v854_v23 }
 0x11f   :  { %637 = vmatpush1.bf16.msra.mxu1 %v852_v24 }
 0x120   :  { %638 = vmatprep.subr.bf16.mxu1 %v857_v25 }
 0x123   :  { %639 = vmatpush1.bf16.msra.mxu1 %v855_v26 }
 0x124   :  { %640 = vmatprep.subr.bf16.mxu1 %v860_v27 }
 0x127   :  { %641 = vmatpush1.bf16.msra.mxu1 %v858_v29 }
 0x128   :  { %753 = vmatprep.subr.msk.bf16.mxu1 %vm473_vm2, %v752_v30 }
 0x12b   :  { %643 = vmatpush1.bf16.msra.mxu1 %v625_v40 }
 0x1e5   :  { %v402_v10 = vpop.f32.mrb[0].mxu1 }
 0x1e6   :  { %v403_v11 = vadd.f32 %v714_v1, %v402_v10  ;;  %v404_v12 = vpop.f32.mrb[1].mxu1 }
 0x1e7   :  { %v405_v13 = vpop.f32.mrb[2].mxu1 }
 0x1e8   :  { %v408_v14 = vmax.f32 %v403_v11, 0.0  ;;  %v406_v15 = vpop.f32.mrb[3].mxu1 }
 0x1ea   :  { %v409_v16 = vpack.c.bf16 %v408_v14, %v408_v14 }
 0x1ec   :  { %778 = vmatmul.mubr.msk.bf16.vlgmr.msra.gmra.mrb[4].mxu0 %vm469_vm4, %v409_v16 }
 0x2bf   :  { %v511_v32 = vpop.f32.mrb[4].mxu0 }
 0x2c0   :  { %v512_v33 = vadd.f32 %v729_v31, %v511_v32  ;;  %v779_v34 = vpop.f32.mrb[5].mxu0 }
 0x2c1   :  { %v514_v35 = vpop.f32.mrb[6].mxu0 }
 0x2c2   :  { %v738_v36 = vmul.f32 -1.442695, %v512_v33  ;;  %v780_v37 = vpop.f32.mrb[7].mxu0  ;;  %v517_v43 = vmax.f32 %v512_v33, 0.0 }
 0x2c4   :  { %863 = vpow2.f32 %v738_v36 }
 0x2ce   :  { %v864_v39 = vpop.eup %863 }
 0x2cf   :  { %v521_v41 = vadd.f32 1.0, %v864_v39 }
 0x2d1   :  { %865 = vrcp.f32 %v521_v41 }
 0x2db   :  { %v866_v42 = vpop.eup %865 }
 0x2dc   :  { %525 = vrot.lane.b32.xlu0 %v866_v42, %s874_s7 }
 0x34e   :  { %v526_v44 = vpop.permute.xlu0 %525 }
 0x34f   :  { %v529_v45 = vsel %vm528_vm5, %v517_v43, %v526_v44 }
 0x350   :  { %v530_v46 = vpack.c.bf16 %v529_v45, %v529_v45 }
 0x352   :  { %754 = vmatmul.mubr.msk.bf16.vlgmr.msra.gmra.mrb[4].mxu1 %vm469_vm4, %v530_v46 }
 0x425   :  { %v664_v49 = vpop.f32.mrb[4].mxu1 }
 0x426   :  { %v666_v50 = vpop.f32.mrb[5].mxu1  ;;  %v665_v0 = vadd.f32 %v664_v49, %v549_v62 }
 0x427   :  { %v667_v51 = vadd.f32 %v666_v50, %v553_v48  ;;  %v668_v52 = vpop.f32.mrb[6].mxu1 }
 0x428   :  { %v669_v53 = vpop.f32.mrb[7].mxu1 }
 0x429   :  { %671 = vmax.xlane.f32.xlu0 %v667_v51 }
 0x4b6   :  { %v672_v56 = vpop.xlane.xlu0 %671 }
 0x4b7   :  { %v673_v58 = vsub.f32 %v667_v51, %v672_v56 }
 0x4b9   :  { %v674_v59 = vmul.f32 1.442695, %v673_v58 }
 0x4bb   :  { %867 = vpow2.f32 %v674_v59 }
 0x4c5   :  { %v868_v60 = vpop.eup %867 }
 0x4c6   :  { %676 = vadd.xlane.f32.xlu1 %v868_v60 }
 0x553   :  { %v677_v61 = vpop.xlane.xlu1 %676 }
 0x554   :  { %869 = vrcp.f32 %v677_v61 }
 0x55e   :  { %v870_v63 = vpop.eup %869 }
 0x55f   :  { %v679_v57 = vmul.f32 %v870_v63, %v868_v60 }
 0x561   :  { %v680_v2 = vadd.f32 %v679_v57, %v665_v0 }
 0x563   :  { %681 = vst [vmem:[%s1165_s9] sm:$0xff] %v680_v2 }

</bundles_post_ra>
